<compile_context>
chip_gen: v7x
topology: tpu7x:2x2x1
jax: 0.10.0
libtpu: 0.0.40
codegen_flags: <defaults>
</compile_context>

<pallas_src>
import functools
import math

import jax
import jax.numpy as jnp
import numpy as np
from jax.experimental import pallas as pl
from jax.experimental.pallas import tpu as pltpu


def _taylor_ce_kernel(logits_ref, labels_ref, loss_sum_ref, count_ref,
                      loss_acc, count_acc,
                      *, n_taylor: int, ignore_index: int, hw_total: int,
                      tile_hw: int):
    ni = pl.program_id(0)
    ji = pl.program_id(1)
    is_first = jnp.logical_and(ni == 0, ji == 0)
    is_last = jnp.logical_and(ni == pl.num_programs(0) - 1,
                              ji == pl.num_programs(1) - 1)

    @pl.when(is_first)
    def _():
        loss_acc[...] = jnp.zeros_like(loss_acc)
        count_acc[...] = jnp.zeros_like(count_acc)

    x = logits_ref[...].astype(jnp.float32)       # (C, tile_hw)
    labels = labels_ref[...]                      # (1, tile_hw) int32

    # Taylor expansion of exp, Horner form with reciprocal-factorial constants:
    #   fn = 1 + x*(1/1! + x*(1/2! + ... + x*(1/n!)))
    inv_fact = [1.0 / math.factorial(k) for k in range(1, n_taylor + 1)]
    poly = jnp.full_like(x, inv_fact[-1])
    for k in range(n_taylor - 2, -1, -1):
        poly = poly * x + inv_fact[k]
    fn = poly * x + 1.0                           # (C, tile_hw)

    denom = jnp.sum(fn, axis=0, keepdims=True)    # (1, tile_hw), sum over classes

    # Gather fn at the label index via a one-hot compare (vectorized gather).
    class_ids = jax.lax.broadcasted_iota(jnp.int32, x.shape, 0)      # (C, tile_hw)
    onehot = class_ids == labels                                     # broadcast
    fn_at_label = jnp.sum(jnp.where(onehot, fn, 0.0), axis=0,
                          keepdims=True)                             # (1, tile_hw)

    # Validity: label != ignore_index AND inside the true H*W extent (the last
    # spatial tile may be partial; OOB lanes are masked instead of padding the
    # logits in HBM).
    col = jax.lax.broadcasted_iota(jnp.int32, labels.shape, 1) + ji * tile_hw
    valid = jnp.logical_and(labels != ignore_index, col < hw_total)

    safe_fn = jnp.where(valid, fn_at_label, 1.0)
    safe_denom = jnp.where(valid, denom, 1.0)
    # nll = -(log fn - log denom)
    nll = jnp.where(valid, jnp.log(safe_denom) - jnp.log(safe_fn), 0.0)

    loss_acc[...] = loss_acc[...] + nll
    count_acc[...] = count_acc[...] + valid.astype(jnp.float32)

    @pl.when(is_last)
    def _():
        loss_sum_ref[...] = jnp.sum(loss_acc[...]).reshape(1, 1)
        count_ref[...] = jnp.sum(count_acc[...]).reshape(1, 1)


def taylor_cross_entropy_loss(logits_nchw, labels_nhw, *, n=2, ignore_index=-1,
                              max_block_bytes=2 * 1024 * 1024):
    """logits_nchw: (N, C, H, W) float; labels_nhw: (N, H, W) int.
    Returns scalar mean loss over non-ignored positions (PyTorch nll_loss 'mean')."""
    assert n % 2 == 0
    N, C, H, W = logits_nchw.shape
    HW = H * W

    # Free reshapes only (no transpose, no pad): channels stay second, the
    # spatial axis lands on the 128-lane axis.
    logits = logits_nchw.reshape(N, C, HW)
    labels = labels_nhw.reshape(N, 1, HW).astype(jnp.int32)

    # Spatial tile: biggest lane-dense tile within a per-block byte budget
    # (block bytes = C * tile_hw * 4; x2 pipeline buffers + labels + scratch
    # stays well inside VMEM on v5e / v6e / v7x).
    cap = max(128, ((max_block_bytes // (C * 4)) // 128) * 128)
    tile_hw = HW if HW <= cap else cap
    num_hw_tiles = pl.cdiv(HW, tile_hw)

    kernel = functools.partial(_taylor_ce_kernel, n_taylor=n,
                               ignore_index=ignore_index, hw_total=HW,
                               tile_hw=tile_hw)

    loss_sum, count = pl.pallas_call(
        kernel,
        out_shape=(jax.ShapeDtypeStruct((1, 1), jnp.float32),
                   jax.ShapeDtypeStruct((1, 1), jnp.float32)),
        grid_spec=pltpu.PrefetchScalarGridSpec(
            num_scalar_prefetch=0,
            grid=(N, num_hw_tiles),
            in_specs=[
                pl.BlockSpec((pl.Squeezed(), C, tile_hw),
                             lambda ni, ji: (ni, 0, ji)),
                pl.BlockSpec((pl.Squeezed(), 1, tile_hw),
                             lambda ni, ji: (ni, 0, ji)),
            ],
            out_specs=[
                pl.BlockSpec((1, 1), lambda ni, ji: (0, 0)),
                pl.BlockSpec((1, 1), lambda ni, ji: (0, 0)),
            ],
            scratch_shapes=[
                pltpu.VMEM((1, tile_hw), jnp.float32),   # per-lane loss partials
                pltpu.VMEM((1, tile_hw), jnp.float32),   # per-lane valid counts
            ],
        ),
        # Persistent scratch accumulators + finalize-on-last require a
        # sequential grid, so both axes are 'arbitrary'.
        # TODO(synk): per-core partial-sum outputs would unlock the second
        # TensorCore on v7x.
        compiler_params=pltpu.CompilerParams(
            dimension_semantics=("arbitrary", "arbitrary"),
            vmem_limit_bytes=32 * 1024 * 1024),
    )(logits, labels)

    return (loss_sum[0, 0] / count[0, 0]).astype(jnp.float32)


def _reference(logits_nchw, labels_nhw, n=2, ignore_index=-1):
    x = logits_nchw.astype(jnp.float32)
    fn = jnp.ones_like(x)
    denor = 1.0
    for k in range(1, n + 1):
        denor *= k
        fn = fn + x ** k / denor
    probs = fn / jnp.sum(fn, axis=1, keepdims=True)
    logp = jnp.log(probs)                                   # (N, C, H, W)
    lbl = labels_nhw
    valid = lbl != ignore_index
    safe_lbl = jnp.where(valid, lbl, 0)
    picked = jnp.take_along_axis(logp, safe_lbl[:, None, :, :], axis=1)[:, 0]
    nll = jnp.where(valid, -picked, 0.0)
    return jnp.sum(nll) / jnp.sum(valid.astype(jnp.float32))


if __name__ == "__main__":
    key = jax.random.PRNGKey(0)
    k1, k2 = jax.random.split(key)

    N, C, H, W = 2, 10, 16, 16
    logits = jax.random.normal(k1, (N, C, H, W), dtype=jnp.float32)
    labels = jax.random.randint(k2, (N, H, W), 0, C, dtype=jnp.int32)
    # Sprinkle a few ignore_index entries to exercise masking.
    labels = labels.at[0, 0, :4].set(-1)

    loss = taylor_cross_entropy_loss(logits, labels, n=2, ignore_index=-1)
    loss = jax.block_until_ready(loss)

    ref = jax.block_until_ready(_reference(logits, labels, n=2, ignore_index=-1))
    assert np.allclose(np.asarray(loss), np.asarray(ref), rtol=1e-5, atol=1e-5), (
        loss, ref)

    print("KERNEL_OK")
</pallas_src>

<mosaic_0001>
module attributes {stable_mosaic.version = 11 : i64} {
  func.func @_taylor_ce_kernel(%arg0: i32, %arg1: i32, %arg2: memref<1x10x256xf32, #tpu.memory_space<vmem>>, %arg3: memref<1x1x256xi32, #tpu.memory_space<vmem>>, %arg4: memref<1x1xf32, #tpu.memory_space<vmem>>, %arg5: memref<1x1xf32, #tpu.memory_space<vmem>>, %arg6: memref<1x256xf32, #tpu.memory_space<vmem>>, %arg7: memref<1x256xf32, #tpu.memory_space<vmem>>) attributes {dimension_semantics = [#tpu.dimension_semantics<arbitrary>, #tpu.dimension_semantics<arbitrary>], iteration_bounds = array<i64: 2, 1>, scalar_prefetch = 0 : i64, scratch_operands = 2 : i64, tpu.core_type = #tpu.core_type<tc>, window_params = [{transform_indices = @transform_0, window_bounds = array<i64: 1, 10, 256>}, {transform_indices = @transform_1, window_bounds = array<i64: 1, 1, 256>}, {pipeline_mode = #tpu.pipeline_mode<synchronous>, transform_indices = @transform_2, window_bounds = array<i64: 1, 1>}, {pipeline_mode = #tpu.pipeline_mode<synchronous>, transform_indices = @transform_3, window_bounds = array<i64: 1, 1>}]} {
    %c0_i32 = arith.constant 0 : i32
    %0 = arith.cmpi eq, %arg0, %c0_i32 : i32
    %c0_i32_0 = arith.constant 0 : i32
    %1 = arith.cmpi eq, %arg1, %c0_i32_0 : i32
    %2 = arith.andi %0, %1 : i1
    %c1_i32 = arith.constant 1 : i32
    %3 = arith.cmpi eq, %arg0, %c1_i32 : i32
    %c0_i32_1 = arith.constant 0 : i32
    %4 = arith.cmpi eq, %arg1, %c0_i32_1 : i32
    %5 = arith.andi %3, %4 : i1
    %6 = arith.extui %2 : i1 to i32
    %c0_i32_2 = arith.constant 0 : i32
    %7 = arith.cmpi ne, %6, %c0_i32_2 : i32
    scf.if %7 {
      %cst_26 = arith.constant 0.000000e+00 : f32
      %56 = vector.broadcast %cst_26 : f32 to vector<1x256xf32>
      %c0_27 = arith.constant 0 : index
      %c0_28 = arith.constant 0 : index
      %57 = vector.load %arg6[%c0_27, %c0_28] : memref<1x256xf32, #tpu.memory_space<vmem>>, vector<1x256xf32>
      tpu.vector_store %arg6[%c0_27, %c0_28], %56 {strides = array<i32>} : memref<1x256xf32, #tpu.memory_space<vmem>>, vector<1x256xf32>,
      %cst_29 = arith.constant 0.000000e+00 : f32
      %58 = vector.broadcast %cst_29 : f32 to vector<1x256xf32>
      %c0_30 = arith.constant 0 : index
      %c0_31 = arith.constant 0 : index
      %59 = vector.load %arg7[%c0_30, %c0_31] : memref<1x256xf32, #tpu.memory_space<vmem>>, vector<1x256xf32>
      tpu.vector_store %arg7[%c0_30, %c0_31], %58 {strides = array<i32>} : memref<1x256xf32, #tpu.memory_space<vmem>>, vector<1x256xf32>,
    } else {
    }
    %c0 = arith.constant 0 : index
    %c0_3 = arith.constant 0 : index
    %c0_4 = arith.constant 0 : index
    %8 = vector.load %arg2[%c0, %c0_3, %c0_4] : memref<1x10x256xf32, #tpu.memory_space<vmem>>, vector<1x10x256xf32>
    %9 = vector.shape_cast %8 : vector<1x10x256xf32> to vector<10x256xf32>
    %c0_5 = arith.constant 0 : index
    %c0_6 = arith.constant 0 : index
    %c0_7 = arith.constant 0 : index
    %10 = vector.load %arg3[%c0_5, %c0_6, %c0_7] : memref<1x1x256xi32, #tpu.memory_space<vmem>>, vector<1x1x256xi32>
    %11 = vector.shape_cast %10 : vector<1x1x256xi32> to vector<1x256xi32>
    %cst = arith.constant 5.000000e-01 : f32
    %12 = vector.broadcast %cst : f32 to vector<10x256xf32>
    %13 = arith.mulf %12, %9 : vector<10x256xf32>
    %cst_8 = arith.constant 1.000000e+00 : f32
    %14 = vector.broadcast %cst_8 : f32 to vector<10x256xf32>
    %15 = arith.addf %13, %14 : vector<10x256xf32>
    %16 = arith.mulf %15, %9 : vector<10x256xf32>
    %cst_9 = arith.constant 1.000000e+00 : f32
    %17 = vector.broadcast %cst_9 : f32 to vector<10x256xf32>
    %18 = arith.addf %16, %17 : vector<10x256xf32>
    %cst_10 = arith.constant dense<0.000000e+00> : vector<256xf32>
    %19 = vector.multi_reduction <add>, %18, %cst_10 [0] : vector<10x256xf32> to vector<256xf32>
    %20 = vector.shape_cast %19 : vector<256xf32> to vector<1x256xf32>
    %21 = tpu.iota {dimensions = array<i32: 0>} : vector<10x256xi32>
    %22 = vector.broadcast %11 : vector<1x256xi32> to vector<10x256xi32>
    %23 = arith.cmpi eq, %21, %22 : vector<10x256xi32>
    %cst_11 = arith.constant 0.000000e+00 : f32
    %24 = vector.broadcast %cst_11 : f32 to vector<10x256xf32>
    %25 = arith.select %23, %18, %24 : vector<10x256xi1>, vector<10x256xf32>
    %cst_12 = arith.constant dense<0.000000e+00> : vector<256xf32>
    %26 = vector.multi_reduction <add>, %25, %cst_12 [0] : vector<10x256xf32> to vector<256xf32>
    %27 = vector.shape_cast %26 : vector<256xf32> to vector<1x256xf32>
    %28 = tpu.iota {dimensions = array<i32: 1>} : vector<1x256xi32>
    %c256_i32 = arith.constant 256 : i32
    %29 = arith.muli %arg1, %c256_i32 : i32
    %30 = vector.broadcast %29 : i32 to vector<1x256xi32>
    %31 = arith.addi %28, %30 : vector<1x256xi32>
    %c-1_i32 = arith.constant -1 : i32
    %32 = vector.broadcast %c-1_i32 : i32 to vector<1x256xi32>
    %33 = arith.cmpi ne, %11, %32 : vector<1x256xi32>
    %c256_i32_13 = arith.constant 256 : i32
    %34 = vector.broadcast %c256_i32_13 : i32 to vector<1x256xi32>
    %35 = arith.cmpi slt, %31, %34 : vector<1x256xi32>
    %36 = arith.andi %33, %35 : vector<1x256xi1>
    %cst_14 = arith.constant 1.000000e+00 : f32
    %37 = vector.broadcast %cst_14 : f32 to vector<1x256xf32>
    %38 = arith.select %36, %27, %37 : vector<1x256xi1>, vector<1x256xf32>
    %cst_15 = arith.constant 1.000000e+00 : f32
    %39 = vector.broadcast %cst_15 : f32 to vector<1x256xf32>
    %40 = arith.select %36, %20, %39 : vector<1x256xi1>, vector<1x256xf32>
    %41 = math.log %40 : vector<1x256xf32>
    %42 = math.log %38 : vector<1x256xf32>
    %43 = arith.subf %41, %42 : vector<1x256xf32>
    %cst_16 = arith.constant 0.000000e+00 : f32
    %44 = vector.broadcast %cst_16 : f32 to vector<1x256xf32>
    %45 = arith.select %36, %43, %44 : vector<1x256xi1>, vector<1x256xf32>
    %c0_17 = arith.constant 0 : index
    %c0_18 = arith.constant 0 : index
    %46 = vector.load %arg6[%c0_17, %c0_18] : memref<1x256xf32, #tpu.memory_space<vmem>>, vector<1x256xf32>
    %47 = arith.addf %46, %45 : vector<1x256xf32>
    %c0_19 = arith.constant 0 : index
    %c0_20 = arith.constant 0 : index
    %48 = vector.load %arg6[%c0_19, %c0_20] : memref<1x256xf32, #tpu.memory_space<vmem>>, vector<1x256xf32>
    tpu.vector_store %arg6[%c0_19, %c0_20], %47 {strides = array<i32>} : memref<1x256xf32, #tpu.memory_space<vmem>>, vector<1x256xf32>,
    %c0_21 = arith.constant 0 : index
    %c0_22 = arith.constant 0 : index
    %49 = vector.load %arg7[%c0_21, %c0_22] : memref<1x256xf32, #tpu.memory_space<vmem>>, vector<1x256xf32>
    %50 = arith.extui %36 : vector<1x256xi1> to vector<1x256xi32>
    %51 = arith.sitofp %50 : vector<1x256xi32> to vector<1x256xf32>
    %52 = arith.addf %49, %51 : vector<1x256xf32>
    %c0_23 = arith.constant 0 : index
    %c0_24 = arith.constant 0 : index
    %53 = vector.load %arg7[%c0_23, %c0_24] : memref<1x256xf32, #tpu.memory_space<vmem>>, vector<1x256xf32>
    tpu.vector_store %arg7[%c0_23, %c0_24], %52 {strides = array<i32>} : memref<1x256xf32, #tpu.memory_space<vmem>>, vector<1x256xf32>,
    %54 = arith.extui %5 : i1 to i32
    %c0_i32_25 = arith.constant 0 : i32
    %55 = arith.cmpi ne, %54, %c0_i32_25 : i32
    scf.if %55 {
      %c0_26 = arith.constant 0 : index
      %c0_27 = arith.constant 0 : index
      %56 = vector.load %arg6[%c0_26, %c0_27] : memref<1x256xf32, #tpu.memory_space<vmem>>, vector<1x256xf32>
      %57 = vector.shape_cast %56 : vector<1x256xf32> to vector<1x1x256xf32>
      %cst_28 = arith.constant dense<0.000000e+00> : vector<1xf32>
      %58 = vector.multi_reduction <add>, %57, %cst_28 [1, 2] : vector<1x1x256xf32> to vector<1xf32>
      %59 = vector.shape_cast %58 : vector<1xf32> to vector<1x1x1xf32>
      %60 = vector.extract %59[0, 0, 0] : f32 from vector<1x1x1xf32>
      %61 = vector.broadcast %60 : f32 to vector<1x1xf32>
      %c0_29 = arith.constant 0 : index
      %c0_30 = arith.constant 0 : index
      %62 = vector.load %arg4[%c0_29, %c0_30] : memref<1x1xf32, #tpu.memory_space<vmem>>, vector<1x1xf32>
      tpu.vector_store %arg4[%c0_29, %c0_30], %61 {strides = array<i32>} : memref<1x1xf32, #tpu.memory_space<vmem>>, vector<1x1xf32>,
      %c0_31 = arith.constant 0 : index
      %c0_32 = arith.constant 0 : index
      %63 = vector.load %arg7[%c0_31, %c0_32] : memref<1x256xf32, #tpu.memory_space<vmem>>, vector<1x256xf32>
      %64 = vector.shape_cast %63 : vector<1x256xf32> to vector<1x1x256xf32>
      %cst_33 = arith.constant dense<0.000000e+00> : vector<1xf32>
      %65 = vector.multi_reduction <add>, %64, %cst_33 [1, 2] : vector<1x1x256xf32> to vector<1xf32>
      %66 = vector.shape_cast %65 : vector<1xf32> to vector<1x1x1xf32>
      %67 = vector.extract %66[0, 0, 0] : f32 from vector<1x1x1xf32>
      %68 = vector.broadcast %67 : f32 to vector<1x1xf32>
      %c0_34 = arith.constant 0 : index
      %c0_35 = arith.constant 0 : index
      %69 = vector.load %arg5[%c0_34, %c0_35] : memref<1x1xf32, #tpu.memory_space<vmem>>, vector<1x1xf32>
      tpu.vector_store %arg5[%c0_34, %c0_35], %68 {strides = array<i32>} : memref<1x1xf32, #tpu.memory_space<vmem>>, vector<1x1xf32>,
    } else {
    }
    return
  }
  func.func @transform_0(%arg0: i32, %arg1: i32) -> (i32, i32, i32) {
    %c0_i32 = arith.constant 0 : i32
    %c0_i32_0 = arith.constant 0 : i32
    return %arg0, %c0_i32, %arg1 : i32, i32, i32
  }
  func.func @transform_1(%arg0: i32, %arg1: i32) -> (i32, i32, i32) {
    %c0_i32 = arith.constant 0 : i32
    %c0_i32_0 = arith.constant 0 : i32
    return %arg0, %c0_i32, %arg1 : i32, i32, i32
  }
  func.func @transform_2(%arg0: i32, %arg1: i32) -> (i32, i32) {
    %c0_i32 = arith.constant 0 : i32
    %c0_i32_0 = arith.constant 0 : i32
    %c0_i32_1 = arith.constant 0 : i32
    return %c0_i32, %c0_i32_0 : i32, i32
  }
  func.func @transform_3(%arg0: i32, %arg1: i32) -> (i32, i32) {
    %c0_i32 = arith.constant 0 : i32
    %c0_i32_0 = arith.constant 0 : i32
    %c0_i32_1 = arith.constant 0 : i32
    return %c0_i32, %c0_i32_0 : i32, i32
  }
}

</mosaic_0001>

<bundles_post_ra>
// kernel: tpu_custom_call.1
= control target key start
LH: loop header
LB: loop body
LE: loop exit
PB: predicated region body
PF: predicated region fallthrough
CT: control target
= control target key end

     0   :  { %9 = vsyncpa [#allocation5], 0  ;;  %s859_s0 = inlined_call_operand.vmem [shape: f32[2,10,256], index: 0, kind: input, shape index: {}]   ;;  %s860_s1 = inlined_call_operand.vmem [shape: s32[2,1,256], index: 1, kind: input, shape index: {}]   ;;  %s861_s2 = inlined_call_operand.hbm [shape: f32[1,1], index: 2, kind: output, shape index: {0}]   ;;  %s862_s3 = inlined_call_operand.hbm [shape: f32[1,1], index: 3, kind: output, shape index: {1}]  }
   0x1   :  { %10 = vsyncpa [#allocation7], 0  ;;  %s723_s12 = smov 0   ;;  %s725_s13 = smov 0  }
   0x2   :  { %s727_s14 = smov 0  }
   0x3 LB: > { %s544_s15 = sadd.s32 4294967295, %s695_s14   ;;  %s28_s16 = sadd.s32 1, %s691_s13  ;;  %s695_s14 = sphi %s727_s14, %s16_s14   ;;  %s691_s13 = sphi %s725_s13, %s869_s13   ;;  %s687_s12 = sphi %s723_s12, %s868_s12  }
   0x4   : > { %p30_p0 = scmp.ge.s32.totalorder %s28_s16, 2  ;;  %p547_p1 = scmp.ge.s32.totalorder %s695_s14, 1 }
   0x5   : > { %p167_p2 = scmp.lt.s32.totalorder %s695_s14, 3 }
   0x6   : > { %s871_s16 = smov (%p30_p0, %s28_s16), 0 }
   0x7   : > { %p168_p3 = pnand %p547_p1, %p167_p2 }
   0x8   : > { %p199_p4 = scmp.lt.s32.totalorder (!%p168_p3), %s687_s12, 1  ;;  %p217_p5 = scmp.eq.s32.totalorder (!%p168_p3), %s687_s12, 0 }
   0x9   : > { %171 = sbr.rel (%p168_p3) target bundleno = 346 (0x15a), region = 28  ;;  %p221_p6 = scmp.eq.s32.totalorder (!%p168_p3), %s687_s12, 1 }
  0x10   : > { %s200_s17 = scalar_select %p199_p4, %s687_s12, 1 }
  0x11   : > { %225 = sbr.rel (!%p217_p5) target bundleno = 24 (0x18), region = 32  ;;  %v226_v0 = vlaneseq (%p217_p5)  ;;  %v697_v1 = vmov (%p217_p5), 0.0  }
  0x12   : > { %s560_s18 = sshll.u32 %s200_s17, 5  ;;  %s550_s19 = sshll.u32 %s200_s17, 1 }
  0x13   : > { %s206_s22 = scalar_lea.vmem %s859_s0, %s560_s18  ;;  %s215_s25 = scalar_lea.vmem %s860_s1, %s550_s19  ;;  %vm228_vm0 = vcmp.lt.s32.totalorder (%p217_p5), %v226_v0, 256 }
  0x14   : > { %230 = vst.msk [vmem:[#allocation2] sm:$0x3] (%p217_p5), %vm228_vm0, %v697_v1  ;;  %231 = vst.msk [vmem:[#allocation3] sm:$0x3] (%p217_p5), %vm228_vm0, %v697_v1 }
  0x18 PF: > { %v232_v2 = vld [vmem:[%s206_s22] sm:$0xff]  ;;  %v233_v3 = vld [vmem:[%s206_s22 + $0x8] sm:$0xff]  ;;  %v234_v4 = vld [vmem:[%s206_s22 + $0x10] sm:$0x3]  ;;  %v270_v5 = vlaneseq  ;;  %vm253_vm1 = vcmask 1041408   ;;  %v699_v27 = vmov 1  }
  0x19   : > { %v235_v6 = vld [vmem:[%s206_s22 + $0x18] sm:$0x3]  ;;  %v237_v7 = vmul.f32 0.5, %v232_v2  ;;  %v238_v8 = vmul.f32 0.5, %v233_v3  ;;  %v239_v9 = vmul.f32 0.5, %v234_v4  ;;  %v317_v28 = vcombine.low %v699_v27, %v699_v27 }
  0x1a   : > { %v240_v10 = vmul.f32 0.5, %v235_v6  ;;  %v271_v11 = vshrl.u32 %v270_v5, 7  ;;  %v236_v12 = vld [vmem:[%s215_s25] sm:$0x3]  ;;  %v698_v22 = vmov 1966171168  }
  0x1b   : > { %v241_v13 = vadd.f32 1.0, %v237_v7  ;;  %v242_v14 = vadd.f32 1.0, %v238_v8  ;;  %v243_v15 = vadd.f32 1.0, %v239_v9  ;;  %v319_v23 = vunpack.c.l.s4 %v698_v22  ;;  %v385_v57 = vld [vmem:[#allocation3] sm:$0x3] }
  0x1c   : > { %v244_v16 = vadd.f32 1.0, %v240_v10  ;;  %v272_v17 = vadd.s32 8, %v271_v11  ;;  %v755_v18 = vsub.s32 0, %v271_v11  ;;  %v757_v21 = vsub.s32 1, %v271_v11 }
  0x1d   : > { %v245_v19 = vmul.f32 %v241_v13, %v232_v2  ;;  %v246_v20 = vmul.f32 %v242_v14, %v233_v3  ;;  %v247_v24 = vmul.f32 %v243_v15, %v234_v4  ;;  %v320_v32 = vunpack.c.0.s8 %v319_v23 }
  0x1e   : > { %v248_v25 = vmul.f32 %v244_v16, %v235_v6  ;;  %v276_v26 = vrot.slane %v236_v12, %v755_v18  ;;  %v280_v31 = vrot.slane %v236_v12, %v757_v21  ;;  %vm312_vm6 = vcmp.ne.s32.totalorder %v236_v12, 4294967295 }
  0x1f   : > { %v249_v29 = vadd.f32 1.0, %v245_v19  ;;  %v250_v30 = vadd.f32 1.0, %v246_v20  ;;  %v251_v33 = vadd.f32 1.0, %v247_v24  ;;  %v323_v36 = vsub.s32 %v320_v32, %v271_v11 }
  0x20   : > { %v252_v34 = vadd.f32 1.0, %v248_v25  ;;  %vm281_vm2 = vcmp.eq.s32.totalorder %v271_v11, %v276_v26  ;;  %vm283_vm3 = vcmp.eq.s32.totalorder %v272_v17, %v276_v26  ;;  %vm282_vm4 = vcmp.eq.s32.totalorder %v271_v11, %v280_v31 }
  0x21   : > { %vm284_vm5 = vcmp.eq.s32.totalorder %v272_v17, %v280_v31  ;;  %v285_v35 = vsel %vm281_vm2, %v249_v29, 0.0  ;;  %v254_v37 = vsel %vm253_vm1, %v251_v33, 0.0  ;;  %v286_v39 = vsel %vm282_vm4, %v250_v30, 0.0  ;;  %v378_v31 = vld [vmem:[#allocation2] sm:$0x3] }
  0x22   : > { %v262_v38 = vsel %vm253_vm1, %v252_v34, 0.0  ;;  %v287_v40 = vsel %vm283_vm3, %v251_v33, 0.0  ;;  %v255_v41 = vadd.f32 %v254_v37, %v249_v29  ;;  %v288_v43 = vsel %vm284_vm5, %v252_v34, 0.0 }
  0x23   : > { %v263_v42 = vadd.f32 %v262_v38, %v250_v30  ;;  %v289_v44 = vsel %vm253_vm1, %v287_v40, 0.0  ;;  %v297_v46 = vsel %vm253_vm1, %v288_v43, 0.0  ;;  %v324_v47 = vrot.slane %v317_v28, %v323_v36 }
  0x24   : > { %v290_v45 = vadd.f32 %v289_v44, %v285_v35  ;;  %v256_v48 = vrot.slane %v255_v41, 4  ;;  %v298_v50 = vadd.f32 %v297_v46, %v286_v39  ;;  %vm770_vm9 = vcmp.lt.s32.totalorder %v270_v5, 256 }
  0x25   : > { %v264_v49 = vrot.slane %v263_v42, 4  ;;  %v331_v52 = vrot.slane %v324_v47, %v323_v36  ;;  %v700_v0 = vmov 0.0   ;;  %vm404_vm10 = vcmask (%p221_p6), 1040384  }
  0x26   : > { %v291_v51 = vrot.slane %v290_v45, 4  ;;  %v257_v53 = vadd.f32 %v256_v48, %v255_v41  ;;  %v299_v55 = vrot.slane %v298_v50, 4  ;;  %vm418_vm11 = vcmask (%p221_p6), 0  }
  0x27   : > { %v265_v54 = vadd.f32 %v264_v49, %v263_v42  ;;  %vm332_vm7 = vcmp.ne.s32.totalorder %v331_v52, 0 }
  0x28   : > { %v292_v56 = vadd.f32 %v291_v51, %v290_v45  ;;  %v258_v58 = vrot.slane %v257_v53, 2  ;;  %v300_v60 = vadd.f32 %v299_v55, %v298_v50  ;;  %vm765_vm8 = vmand %vm312_vm6, %vm332_vm7 }
  0x29   : > { %v266_v59 = vrot.slane %v265_v54, 2  ;;  %v553_v1 = vsel %vm765_vm8, 1.0, %v700_v0 }
  0x2a   : > { %v293_v62 = vrot.slane %v292_v56, 2  ;;  %v259_v2 = vadd.f32 %v258_v58, %v257_v53  ;;  %v301_v4 = vrot.slane %v300_v60, 2  ;;  %v388_v6 = vadd.f32 %v553_v1, %v385_v57 }
  0x2b   : > { %v267_v3 = vadd.f32 %v266_v59, %v265_v54 }
  0x2c   : > { %v294_v7 = vadd.f32 %v293_v62, %v292_v56  ;;  %v260_v8 = vrot.slane %v259_v2, 1  ;;  %v302_v10 = vadd.f32 %v301_v4, %v300_v60  ;;  %389 = vst.msk [vmem:[#allocation3] sm:$0x3] %vm770_vm9, %v388_v6 }
  0x2d   : > { %v268_v9 = vrot.slane %v267_v3, 1 }
  0x2e   : > { %v295_v11 = vrot.slane %v294_v7, 1  ;;  %v261_v5 = vadd.f32 %v260_v8, %v259_v2  ;;  %v303_v13 = vrot.slane %v302_v10, 1 }
  0x2f   : > { %v269_v12 = vadd.f32 %v268_v9, %v267_v3 }
  0x30   : > { %v296_v14 = vadd.f32 %v295_v11, %v294_v7  ;;  %v304_v15 = vadd.f32 %v303_v13, %v302_v10 }
  0x31   : > { %v355_v16 = vcombine.low %v261_v5, %v269_v12 }
  0x32   : > { %v336_v17 = vcombine.low %v296_v14, %v304_v15 }
  0x33   : > { %v362_v19 = vrot.slane %v355_v16, %v323_v36  ;;  %v420_v35 = vld [vmem:[#allocation3] sm:$0x3] (%p221_p6) }
  0x34   : > { %v343_v20 = vrot.slane %v336_v17, %v323_v36  ;;  %v425_v38 = vrot.slane (%p221_p6), %v420_v35, %v755_v18  ;;  %v429_v39 = vrot.slane (%p221_p6), %v420_v35, %v757_v21 }
  0x35   : > { %v369_v22 = vrot.slane %v362_v19, %v323_v36 }
  0x36   : > { %v350_v23 = vrot.slane %v343_v20, %v323_v36  ;;  %v432_v42 = vsel (%p221_p6), %vm404_vm10, %v425_v38, 0.0  ;;  %v433_v43 = vsel (%p221_p6), %vm404_vm10, %v429_v39, 0.0 }
  0x37   : > { %v371_v24 = vsel %vm765_vm8, %v369_v22, 1.0  ;;  %v434_v45 = vadd.f32 (%p221_p6), %v433_v43, %v432_v42 }
  0x38   : > { %609 = vlog2.f32 %v371_v24  ;;  %v352_v25 = vsel %vm765_vm8, %v350_v23, 1.0 }
  0x39   : > { %611 = vlog2.f32 %v352_v25 }
  0x42   : > { %v610_v26 = vpop.eup %609 }
  0x43   : > { %v373_v27 = vmul.f32 0.6931472, %v610_v26  ;;  %v612_v28 = vpop.eup %611 }
  0x44   : > { %v375_v29 = vmul.f32 0.6931472, %v612_v28 }
  0x45   : > { %391 = sbr.rel (!%p221_p6) target bundleno = 298 (0x12a), region = 36 }
  0x46   : > { %v376_v30 = vsub.f32 %v373_v27, %v375_v29 }
  0x48   : > { %v377_v32 = vsel %vm765_vm8, %v376_v30, 0.0 }
  0x49   : > { %v379_v33 = vadd.f32 %v378_v31, %v377_v32 }
  0x4b   : > { %384 = vst.msk [vmem:[#allocation2] sm:$0x3] %vm770_vm9, %v379_v33 }
  0x52   : > { %v392_v34 = vld [vmem:[#allocation2] sm:$0x3] }
  0x53   : > { %v397_v36 = vrot.slane %v392_v34, %v755_v18  ;;  %v401_v37 = vrot.slane %v392_v34, %v757_v21 }
  0x55   : > { %v405_v40 = vsel %vm404_vm10, %v397_v36, 0.0  ;;  %v406_v41 = vsel %vm404_vm10, %v401_v37, 0.0 }
  0x56   : > { %v407_v44 = vadd.f32 %v406_v41, %v405_v40 }
  0x58   : > { %408 = vadd.xlane.f32.xlu0 %v407_v44 }
  0x5c   : > { %435 = vadd.xlane.f32.xlu0 %v434_v45 }
  0xe5   : > { %v409_v46 = vpop.xlane.xlu0 %408 }
  0xe6   : > { %v410_v47 = vrot.slane %v409_v46, 4 }
  0xe8   : > { %v411_v48 = vadd.f32 %v410_v47, %v409_v46 }
  0xe9   : > { %v436_v49 = vpop.xlane.xlu0 %435 }
  0xea   : > { %v412_v50 = vrot.slane %v411_v48, 2  ;;  %v437_v51 = vrot.slane %v436_v49, 4 }
  0xec   : > { %v438_v52 = vadd.f32 %v437_v51, %v436_v49  ;;  %v413_v53 = vadd.f32 %v412_v50, %v411_v48 }
  0xee   : > { %v439_v54 = vrot.slane %v438_v52, 2  ;;  %v414_v18 = vrot.slane %v413_v53, 1 }
  0xf0   : > { %v440_v55 = vadd.f32 %v439_v54, %v438_v52  ;;  %v415_v21 = vadd.f32 %v414_v18, %v413_v53 }
  0xf2   : > { %563 = vpush %v415_v21  ;;  %v441_v56 = vrot.slane %v440_v55, 1 }
  0xf4   : > { %v442_v57 = vadd.f32 %v441_v56, %v440_v55 }
  0xf6   : > { %565 = vpush %v442_v57 }
 0x123   : > { %s564_s26 = spop %563 }
 0x124   : > { %v417_v58 = vstv %s564_s26 }
 0x125   : > { %419 = vst.msk [vmem:[#allocation4] sm:$0x1] %vm418_vm11, %v417_v58 }
 0x127   : > { %s566_s27 = spop %565 }
 0x128   : > { %v444_v59 = vstv %s566_s27 }
 0x129   : > { %445 = vst.msk [vmem:[#allocation6] sm:$0x1] %vm418_vm11, %v444_v59 }
 0x12a PF: > { %p794_p7 = scmp.eq.s32.totalorder %s544_s15, 1  ;;  %s701_s29 = smov [#allocation4]  }
 0x12b   : > { %s453_s30 = sshll.u32 %s701_s29, 4  ;;  %s702_s4 = smov [#allocation6]   ;;  %s454_s30 = int_to_ptr.vmem [resolvable:$true] %s453_s30 }
 0x12c   : > { %s464_s5 = sshll.u32 %s702_s4, 4  ;;  %s613_s6 = scalar_lea.vmem %s454_s30, 16  ;;  %s798_s5 = int_to_ptr.vmem [resolvable:$true] %s464_s5 }
 0x12d   : > { %p614_p8 = scmp.ne.s32.totalorder %s454_s30, %s613_s6  ;;  %s619_s7 = scalar_lea.vmem %s454_s30, 32 }
 0x12e   : > { %p620_p11 = scmp.lt.s32.totalorder %s454_s30, %s454_s30  ;;  %p621_p12 = scmp.lt.s32.totalorder %s619_s7, %s613_s6 }
 0x12f   : > { %p615_p9 = pnand %p614_p8, %p794_p7 }
 0x130   : > { %p622_p13 = por %p621_p12, %p620_p11 }
 0x131   : > { %p616_p10 = pneg %p615_p9 }
 0x133   : > { %p623_p0 = pnand %p622_p13, %p616_p10 }
 0x135   : > { %626 = shalt.err (!%p623_p0)
}
 0x136   : > { %s627_s10 = scalar_lea.hbm %s861_s2, 16 }
 0x137   : > { %p628_p1 = scmp.ne.s32.totalorder %s861_s2, %s627_s10  ;;  %p633_p4 = scmp.lt.u32.totalorder %s627_s10, %s861_s2 }
 0x139   : > { %p629_p2 = pnand %p628_p1, %p794_p7 }
 0x13b   : > { %p630_p3 = pneg %p629_p2 }
 0x13d   : > { %p635_p5 = pnand %p633_p4, %p630_p3 }
 0x13f   : > { %638 = shalt.err (!%p635_p5)
}
 0x140   : > { %568 = dma.vmem_to_hbm [thread:$0]  (%p794_p7), %s454_s30, 16, %s861_s2, [#allocation5]  }
 0x141   : > { %s639_s20 = scalar_lea.vmem %s798_s5, 16  ;;  %s645_s21 = scalar_lea.vmem %s798_s5, 32 }
 0x142   : > { %p640_p6 = scmp.ne.s32.totalorder %s798_s5, %s639_s20  ;;  %p646_p10 = scmp.lt.s32.totalorder %s798_s5, %s798_s5 }
 0x143   : > { %p647_p11 = scmp.lt.s32.totalorder %s645_s21, %s639_s20 }
 0x144   : > { %p641_p8 = pnand %p640_p6, %p794_p7 }
 0x145   : > { %p648_p12 = por %p647_p11, %p646_p10 }
 0x146   : > { %p642_p9 = pneg %p641_p8 }
 0x148   : > { %p649_p13 = pnand %p648_p12, %p642_p9 }
 0x14a   : > { %652 = shalt.err (!%p649_p13)
}
 0x14b   : > { %s653_s24 = scalar_lea.hbm %s862_s3, 16 }
 0x14c   : > { %p654_p0 = scmp.ne.s32.totalorder %s862_s3, %s653_s24  ;;  %p659_p3 = scmp.lt.u32.totalorder %s653_s24, %s862_s3 }
 0x14e   : > { %p655_p1 = pnand %p654_p0, %p794_p7 }
 0x150   : > { %p656_p2 = pneg %p655_p1 }
 0x152   : > { %p661_p4 = pnand %p659_p3, %p656_p2 }
 0x154   : > { %664 = shalt.err (!%p661_p4)
}
 0x155   : > { %570 = dma.vmem_to_hbm [thread:$0]  (%p794_p7), %s798_s5, 16, %s862_s3, [#allocation7]  }
 0x156   : > { %678 = dma.done.wait (%p794_p7), [#allocation5], 16  }
 0x157   : > { %680 = vsyncadd (%p794_p7), [#allocation5], 4294967280 }
 0x158   : > { %682 = dma.done.wait (%p794_p7), [#allocation7], 16  }
 0x159   : > { %684 = vsyncadd (%p794_p7), [#allocation7], 4294967280 }
 0x15a PF: > { %s16_s14 = sadd.s32 1, %s695_s14   ;;  %s868_s12 = smov %s691_s13 }
 0x15b   : > { %p13_p5 = scmp.ge.s32.totalorder %s16_s14, 4   ;;  %s869_s13 = smov %s871_s16 }
 0x15d   :  { %15 = sbr.rel (!%p13_p5) target bundleno = 3 (0x3), region = 74 }
 0x164   :  { %481 = vsyncpa [#allocation5], 1 }
 0x165   :  { %483 = vsyncpa [#allocation5 + $0x1], 1 }
 0x166   :  { %484 = vsyncpa [#allocation7], 1 }

</bundles_post_ra>
